<compile_context>
chip_gen: v7x
topology: tpu7x:2x2x1
jax: 0.10.0
libtpu: 0.0.40
codegen_flags: <defaults>
</compile_context>

<pallas_src>
import jax
import jax.numpy as jnp
from jax.experimental import pallas as pl
from jax.experimental.pallas import tpu as pltpu

LANE = 128
MIB = 1024 * 1024


def _round_up(n, m):
    return ((n + m - 1) // m) * m


def mlp_kernel(x_ref, w1_ref, b1_ref, w2_ref, b2_ref, o_ref):
    # hidden = relu(x @ W1 + b1); bf16 operands, f32 MXU accumulation.
    h = jnp.dot(x_ref[...], w1_ref[...], preferred_element_type=jnp.float32)
    h = jnp.maximum(h + b1_ref[...], 0.0)            # b1 is (1, Hp): lane-aligned broadcast
    # out = hidden @ W2 + b2; cast hidden to bf16 for the second MXU pass.
    y = jnp.dot(h.astype(jnp.bfloat16), w2_ref[...],
                preferred_element_type=jnp.float32)
    o_ref[...] = (y + b2_ref[...]).astype(o_ref.dtype)   # lane-dense bf16 store


def _vmem_budget_bytes():
    """Generation-aware scoped-VMEM budget (v7x: 64 MiB/TC; v5e/v6e: 128 MiB)."""
    try:
        cap = int(pltpu.get_tpu_info().vmem_capacity_bytes)
    except Exception:
        cap = 64 * MIB  # conservative (v7x per-TC) fallback
    return min(int(0.75 * cap), 96 * MIB)


def net_forward(x, w1, b1, w2, b2):
    """x: [B, F]; w1: [F, H]; b1: [1, H]; w2: [H, O]; b2: [1, O] -> [B, O] float32."""
    B, F = x.shape
    H = w1.shape[1]
    O = w2.shape[1]

    # --- pad feature dims to lane width (zero padding is mathematically exact) ---
    Hp = _round_up(H, LANE)
    Op = _round_up(O, LANE)

    xb = x.astype(jnp.bfloat16)
    w1p = jnp.pad(w1.astype(jnp.bfloat16), ((0, 0), (0, Hp - H)))
    b1p = jnp.pad(b1.astype(jnp.float32), ((0, 0), (0, Hp - H)))
    w2p = jnp.pad(w2.astype(jnp.bfloat16), ((0, Hp - H), (0, Op - O)))
    b2p = jnp.pad(b2.astype(jnp.float32), ((0, 0), (0, Op - O)))

    # --- VMEM-budgeted batch-tile selection -----------------------------------
    budget = _vmem_budget_bytes()
    # Conservative accounting: assume double-buffered weights so the fallback
    # (non-Buffered(1)) path is also guaranteed to fit.
    weight_bytes = 2 * (F * Hp * 2 + Hp * Op * 2 + Hp * 4 + Op * 4)
    step_penalty_rows = 32  # rows-equivalent of the ~0.35us fixed cost per grid step
    best_tb, best_score = None, None
    for cand in (2048, 1024, 512, 256, 128, 64, 32, 16):   # multiples of 16 (bf16 sublanes)
        use = weight_bytes + 2 * cand * F * 2 + 2 * cand * Op * 2
        if use > budget:
            continue
        bp_c = _round_up(B, cand)
        score = bp_c + (bp_c // cand) * step_penalty_rows  # padding waste + step overhead
        if best_score is None or score < best_score:
            best_tb, best_score = cand, score
    tb = best_tb if best_tb is not None else 16
    Bp = _round_up(B, tb)
    if Bp != B:
        xb = jnp.pad(xb, ((0, Bp - B), (0, 0)))
    grid = (Bp // tb,)

    vmem_limit = max(32 * MIB, budget)

    # Advisory cost for XLA scheduling around the custom call.
    cost = pl.CostEstimate(
        flops=2 * Bp * (F * Hp + Hp * Op),
        transcendentals=0,
        bytes_accessed=int(
            Bp * F * 2 + F * Hp * 2 + Hp * 4 + Hp * Op * 2 + Op * 4 + Bp * Op * 2
        ),
    )

    def build(single_buffer_weights):
        if single_buffer_weights:
            # Constant index_map (0,0): never re-DMA'd after step 0, so one buffer
            # suffices -> halves the resident weights' VMEM footprint.
            def const_spec(shape):
                return pl.BlockSpec(shape, lambda i: (0, 0),
                                    pipeline_mode=pl.Buffered(1))
        else:
            def const_spec(shape):
                return pl.BlockSpec(shape, lambda i: (0, 0))
        return pl.pallas_call(
            mlp_kernel,
            out_shape=jax.ShapeDtypeStruct((Bp, Op), jnp.bfloat16),
            grid=grid,
            in_specs=[
                pl.BlockSpec((tb, F), lambda i: (i, 0)),  # x: streamed over batch tiles
                const_spec((F, Hp)),                      # W1: VMEM-resident
                const_spec((1, Hp)),                      # b1: VMEM-resident
                const_spec((Hp, Op)),                     # W2: VMEM-resident
                const_spec((1, Op)),                      # b2: VMEM-resident
            ],
            out_specs=pl.BlockSpec((tb, Op), lambda i: (i, 0)),
            compiler_params=pltpu.CompilerParams(
                dimension_semantics=("parallel",),        # shard batch grid on v7x's 2 TCs
                vmem_limit_bytes=int(vmem_limit),
            ),
            cost_estimate=cost,
        )

    try:
        out = build(True)(xb, w1p, b1p, w2p, b2p)
    except Exception:
        # Some Pallas versions may reject single-buffered blocks; fall back to the
        # default double-buffered (known-good) configuration.
        out = build(False)(xb, w1p, b1p, w2p, b2p)

    # Strip batch / output-lane padding and return f32 (module's output dtype).
    return out[:B, :O].astype(jnp.float32)


if __name__ == "__main__":
    # Small shapes consistent with the module: batch=8, n_features=32,
    # n_hidden=64, n_output=16.
    B, n_features, n_hidden, n_output = 8, 32, 64, 16

    key = jax.random.PRNGKey(0)
    kx, k1, kb1, k2, kb2 = jax.random.split(key, 5)

    x = jax.random.normal(kx, (B, n_features), dtype=jnp.float32)

    # Deterministic parameter init (PyTorch Linear-style uniform bounds).
    bound1 = 1.0 / jnp.sqrt(n_features)
    w1 = jax.random.uniform(k1, (n_features, n_hidden), jnp.float32, -bound1, bound1)
    b1 = jax.random.uniform(kb1, (1, n_hidden), jnp.float32, -bound1, bound1)

    bound2 = 1.0 / jnp.sqrt(n_hidden)
    w2 = jax.random.uniform(k2, (n_hidden, n_output), jnp.float32, -bound2, bound2)
    b2 = jax.random.uniform(kb2, (1, n_output), jnp.float32, -bound2, bound2)

    out = net_forward(x, w1, b1, w2, b2)
    out = jax.block_until_ready(out)
    assert out.shape == (B, n_output)

    # Reference mirroring the kernel's bf16-operand / f32-accumulate / bf16-store math.
    xb = x.astype(jnp.bfloat16).astype(jnp.float32)
    w1b = w1.astype(jnp.bfloat16).astype(jnp.float32)
    w2b = w2.astype(jnp.bfloat16).astype(jnp.float32)
    h_ref = jnp.maximum(xb @ w1b + b1, 0.0)
    y_ref = h_ref.astype(jnp.bfloat16).astype(jnp.float32) @ w2b + b2
    ref = y_ref.astype(jnp.bfloat16).astype(jnp.float32)
    assert jnp.allclose(out, ref, atol=1e-2, rtol=1e-2)

    # Loose sanity vs. the original module's pure-f32 math (bf16 noise only).
    ref_f32 = jnp.maximum(x @ w1 + b1, 0.0) @ w2 + b2
    assert jnp.allclose(out, ref_f32, atol=5e-2, rtol=5e-2)

    print("KERNEL_OK")
</pallas_src>

<mosaic_0001>
module attributes {stable_mosaic.version = 11 : i64} {
  func.func @mlp_kernel(%arg0: i32, %arg1: memref<16x32xbf16, #tpu.memory_space<vmem>>, %arg2: memref<32x128xbf16, #tpu.memory_space<vmem>>, %arg3: memref<1x128xf32, #tpu.memory_space<vmem>>, %arg4: memref<128x128xbf16, #tpu.memory_space<vmem>>, %arg5: memref<1x128xf32, #tpu.memory_space<vmem>>, %arg6: memref<16x128xbf16, #tpu.memory_space<vmem>>) attributes {dimension_semantics = [#tpu.dimension_semantics<parallel>], iteration_bounds = array<i64: 1>, scalar_prefetch = 0 : i64, scratch_operands = 0 : i64, tpu.core_type = #tpu.core_type<tc>, window_params = [{transform_indices = @transform_0, window_bounds = array<i64: 16, 32>}, {pipeline_mode = #tpu.pipeline_mode<synchronous>, transform_indices = @transform_1, window_bounds = array<i64: 32, 128>}, {pipeline_mode = #tpu.pipeline_mode<synchronous>, transform_indices = @transform_2, window_bounds = array<i64: 1, 128>}, {pipeline_mode = #tpu.pipeline_mode<synchronous>, transform_indices = @transform_3, window_bounds = array<i64: 128, 128>}, {pipeline_mode = #tpu.pipeline_mode<synchronous>, transform_indices = @transform_4, window_bounds = array<i64: 1, 128>}, {transform_indices = @transform_5, window_bounds = array<i64: 16, 128>}]} {
    %c0 = arith.constant 0 : index
    %c0_0 = arith.constant 0 : index
    %0 = vector.load %arg1[%c0, %c0_0] : memref<16x32xbf16, #tpu.memory_space<vmem>>, vector<16x32xbf16>
    %c0_1 = arith.constant 0 : index
    %c0_2 = arith.constant 0 : index
    %1 = vector.load %arg2[%c0_1, %c0_2] : memref<32x128xbf16, #tpu.memory_space<vmem>>, vector<32x128xbf16>
    %cst = arith.constant dense<0.000000e+00> : vector<16x128xf32>
    %2 = tpu.matmul %0, %1, %cst {dimension_numbers = #tpu.dot_dimension_numbers<[1], [0], [0], [1], [0, 0, 1, 1], [], []>} : vector<16x32xbf16>, vector<32x128xbf16>, vector<16x128xf32> -> vector<16x128xf32>
    %c0_3 = arith.constant 0 : index
    %c0_4 = arith.constant 0 : index
    %3 = vector.load %arg3[%c0_3, %c0_4] : memref<1x128xf32, #tpu.memory_space<vmem>>, vector<1x128xf32>
    %4 = vector.broadcast %3 : vector<1x128xf32> to vector<16x128xf32>
    %5 = arith.addf %2, %4 : vector<16x128xf32>
    %cst_5 = arith.constant 0.000000e+00 : f32
    %6 = vector.broadcast %cst_5 : f32 to vector<16x128xf32>
    %7 = arith.maximumf %5, %6 : vector<16x128xf32>
    %8 = arith.truncf %7 : vector<16x128xf32> to vector<16x128xbf16>
    %c0_6 = arith.constant 0 : index
    %c0_7 = arith.constant 0 : index
    %9 = vector.load %arg4[%c0_6, %c0_7] : memref<128x128xbf16, #tpu.memory_space<vmem>>, vector<128x128xbf16>
    %cst_8 = arith.constant dense<0.000000e+00> : vector<16x128xf32>
    %10 = tpu.matmul %8, %9, %cst_8 {dimension_numbers = #tpu.dot_dimension_numbers<[1], [0], [0], [1], [0, 0, 1, 1], [], []>} : vector<16x128xbf16>, vector<128x128xbf16>, vector<16x128xf32> -> vector<16x128xf32>
    %c0_9 = arith.constant 0 : index
    %c0_10 = arith.constant 0 : index
    %11 = vector.load %arg5[%c0_9, %c0_10] : memref<1x128xf32, #tpu.memory_space<vmem>>, vector<1x128xf32>
    %12 = vector.broadcast %11 : vector<1x128xf32> to vector<16x128xf32>
    %13 = arith.addf %10, %12 : vector<16x128xf32>
    %14 = arith.truncf %13 : vector<16x128xf32> to vector<16x128xbf16>
    %c0_11 = arith.constant 0 : index
    %c0_12 = arith.constant 0 : index
    %15 = vector.load %arg6[%c0_11, %c0_12] : memref<16x128xbf16, #tpu.memory_space<vmem>>, vector<16x128xbf16>
    tpu.vector_store %arg6[%c0_11, %c0_12], %14 {strides = array<i32>} : memref<16x128xbf16, #tpu.memory_space<vmem>>, vector<16x128xbf16>,
    return
  }
  func.func @transform_0(%arg0: i32) -> (i32, i32) {
    %c0_i32 = arith.constant 0 : i32
    %c0_i32_0 = arith.constant 0 : i32
    return %arg0, %c0_i32 : i32, i32
  }
  func.func @transform_1(%arg0: i32) -> (i32, i32) {
    %c0_i32 = arith.constant 0 : i32
    %c0_i32_0 = arith.constant 0 : i32
    %c0_i32_1 = arith.constant 0 : i32
    return %c0_i32, %c0_i32_0 : i32, i32
  }
  func.func @transform_2(%arg0: i32) -> (i32, i32) {
    %c0_i32 = arith.constant 0 : i32
    %c0_i32_0 = arith.constant 0 : i32
    %c0_i32_1 = arith.constant 0 : i32
    return %c0_i32, %c0_i32_0 : i32, i32
  }
  func.func @transform_3(%arg0: i32) -> (i32, i32) {
    %c0_i32 = arith.constant 0 : i32
    %c0_i32_0 = arith.constant 0 : i32
    %c0_i32_1 = arith.constant 0 : i32
    return %c0_i32, %c0_i32_0 : i32, i32
  }
  func.func @transform_4(%arg0: i32) -> (i32, i32) {
    %c0_i32 = arith.constant 0 : i32
    %c0_i32_0 = arith.constant 0 : i32
    %c0_i32_1 = arith.constant 0 : i32
    return %c0_i32, %c0_i32_0 : i32, i32
  }
  func.func @transform_5(%arg0: i32) -> (i32, i32) {
    %c0_i32 = arith.constant 0 : i32
    %c0_i32_0 = arith.constant 0 : i32
    return %arg0, %c0_i32 : i32, i32
  }
}

module attributes {stable_mosaic.version = 11 : i64} {
  func.func @mlp_kernel(%arg0: i32, %arg1: memref<16x32xbf16, #tpu.memory_space<vmem>>, %arg2: memref<32x128xbf16, #tpu.memory_space<vmem>>, %arg3: memref<1x128xf32, #tpu.memory_space<vmem>>, %arg4: memref<128x128xbf16, #tpu.memory_space<vmem>>, %arg5: memref<1x128xf32, #tpu.memory_space<vmem>>, %arg6: memref<16x128xbf16, #tpu.memory_space<vmem>>) attributes {dimension_semantics = [#tpu.dimension_semantics<parallel>], iteration_bounds = array<i64: 1>, scalar_prefetch = 0 : i64, scratch_operands = 0 : i64, tpu.core_type = #tpu.core_type<tc>, window_params = [{transform_indices = @transform_0, window_bounds = array<i64: 16, 32>}, {pipeline_mode = #tpu.pipeline_mode<synchronous>, transform_indices = @transform_1, window_bounds = array<i64: 32, 128>}, {pipeline_mode = #tpu.pipeline_mode<synchronous>, transform_indices = @transform_2, window_bounds = array<i64: 1, 128>}, {pipeline_mode = #tpu.pipeline_mode<synchronous>, transform_indices = @transform_3, window_bounds = array<i64: 128, 128>}, {pipeline_mode = #tpu.pipeline_mode<synchronous>, transform_indices = @transform_4, window_bounds = array<i64: 1, 128>}, {transform_indices = @transform_5, window_bounds = array<i64: 16, 128>}]} {
    %c0 = arith.constant 0 : index
    %c0_0 = arith.constant 0 : index
    %0 = vector.load %arg1[%c0, %c0_0] : memref<16x32xbf16, #tpu.memory_space<vmem>>, vector<16x32xbf16>
    %c0_1 = arith.constant 0 : index
    %c0_2 = arith.constant 0 : index
    %1 = vector.load %arg2[%c0_1, %c0_2] : memref<32x128xbf16, #tpu.memory_space<vmem>>, vector<32x128xbf16>
    %cst = arith.constant dense<0.000000e+00> : vector<16x128xf32>
    %2 = tpu.matmul %0, %1, %cst {dimension_numbers = #tpu.dot_dimension_numbers<[1], [0], [0], [1], [0, 0, 1, 1], [], []>} : vector<16x32xbf16>, vector<32x128xbf16>, vector<16x128xf32> -> vector<16x128xf32>
    %c0_3 = arith.constant 0 : index
    %c0_4 = arith.constant 0 : index
    %3 = vector.load %arg3[%c0_3, %c0_4] : memref<1x128xf32, #tpu.memory_space<vmem>>, vector<1x128xf32>
    %4 = vector.broadcast %3 : vector<1x128xf32> to vector<16x128xf32>
    %5 = arith.addf %2, %4 : vector<16x128xf32>
    %cst_5 = arith.constant 0.000000e+00 : f32
    %6 = vector.broadcast %cst_5 : f32 to vector<16x128xf32>
    %7 = arith.maximumf %5, %6 : vector<16x128xf32>
    %8 = arith.truncf %7 : vector<16x128xf32> to vector<16x128xbf16>
    %c0_6 = arith.constant 0 : index
    %c0_7 = arith.constant 0 : index
    %9 = vector.load %arg4[%c0_6, %c0_7] : memref<128x128xbf16, #tpu.memory_space<vmem>>, vector<128x128xbf16>
    %cst_8 = arith.constant dense<0.000000e+00> : vector<16x128xf32>
    %10 = tpu.matmul %8, %9, %cst_8 {dimension_numbers = #tpu.dot_dimension_numbers<[1], [0], [0], [1], [0, 0, 1, 1], [], []>} : vector<16x128xbf16>, vector<128x128xbf16>, vector<16x128xf32> -> vector<16x128xf32>
    %c0_9 = arith.constant 0 : index
    %c0_10 = arith.constant 0 : index
    %11 = vector.load %arg5[%c0_9, %c0_10] : memref<1x128xf32, #tpu.memory_space<vmem>>, vector<1x128xf32>
    %12 = vector.broadcast %11 : vector<1x128xf32> to vector<16x128xf32>
    %13 = arith.addf %10, %12 : vector<16x128xf32>
    %14 = arith.truncf %13 : vector<16x128xf32> to vector<16x128xbf16>
    %c0_11 = arith.constant 0 : index
    %c0_12 = arith.constant 0 : index
    %15 = vector.load %arg6[%c0_11, %c0_12] : memref<16x128xbf16, #tpu.memory_space<vmem>>, vector<16x128xbf16>
    tpu.vector_store %arg6[%c0_11, %c0_12], %14 {strides = array<i32>} : memref<16x128xbf16, #tpu.memory_space<vmem>>, vector<16x128xbf16>,
    return
  }
  func.func @transform_0(%arg0: i32) -> (i32, i32) {
    %c0_i32 = arith.constant 0 : i32
    %c0_i32_0 = arith.constant 0 : i32
    return %arg0, %c0_i32 : i32, i32
  }
  func.func @transform_1(%arg0: i32) -> (i32, i32) {
    %c0_i32 = arith.constant 0 : i32
    %c0_i32_0 = arith.constant 0 : i32
    %c0_i32_1 = arith.constant 0 : i32
    return %c0_i32, %c0_i32_0 : i32, i32
  }
  func.func @transform_2(%arg0: i32) -> (i32, i32) {
    %c0_i32 = arith.constant 0 : i32
    %c0_i32_0 = arith.constant 0 : i32
    %c0_i32_1 = arith.constant 0 : i32
    return %c0_i32, %c0_i32_0 : i32, i32
  }
  func.func @transform_3(%arg0: i32) -> (i32, i32) {
    %c0_i32 = arith.constant 0 : i32
    %c0_i32_0 = arith.constant 0 : i32
    %c0_i32_1 = arith.constant 0 : i32
    return %c0_i32, %c0_i32_0 : i32, i32
  }
  func.func @transform_4(%arg0: i32) -> (i32, i32) {
    %c0_i32 = arith.constant 0 : i32
    %c0_i32_0 = arith.constant 0 : i32
    %c0_i32_1 = arith.constant 0 : i32
    return %c0_i32, %c0_i32_0 : i32, i32
  }
  func.func @transform_5(%arg0: i32) -> (i32, i32) {
    %c0_i32 = arith.constant 0 : i32
    %c0_i32_0 = arith.constant 0 : i32
    return %arg0, %c0_i32 : i32, i32
  }
}

</mosaic_0001>

<bundles_post_ra>
// kernel: tpu_custom_call.1
= control target key start
LH: loop header
LB: loop body
LE: loop exit
PB: predicated region body
PF: predicated region fallthrough
CT: control target
= control target key end

     0   :  { %10 = vsyncpa [#allocation3], 0  ;;  %s568_s0 = inlined_call_operand.hbm [shape: bf16[16,32], index: 0, kind: input, shape index: {}]   ;;  %s569_s1 = inlined_call_operand.hbm [shape: bf16[32,128], index: 1, kind: input, shape index: {}]   ;;  %s570_s2 = inlined_call_operand.vmem [shape: f32[1,128], index: 2, kind: input, shape index: {}]   ;;  %s571_s3 = inlined_call_operand.hbm [shape: bf16[128,128], index: 3, kind: input, shape index: {}]   ;;  %s572_s4 = inlined_call_operand.vmem [shape: f32[1,128], index: 4, kind: input, shape index: {}]   ;;  %s573_s5 = inlined_call_operand.hbm [shape: bf16[16,128], index: 5, kind: output, shape index: {}]  }
   0x1   :  { %11 = vsyncpa [#allocation6], 0 }
   0x2   :  { %12 = vsyncpa [#allocation4], 0  ;;  %s457_s18 = smov [#allocation5]   ;;  %s458_s20 = smov [#allocation2]  }
   0x3   :  { %s30_s19 = sshll.u32 %s457_s18, 4  ;;  %s18_s21 = sshll.u32 %s458_s20, 4  ;;  %s31_s19 = int_to_ptr.vmem [resolvable:$true] %s30_s19  ;;  %s495_s21 = int_to_ptr.vmem [resolvable:$true] %s18_s21 }
   0x4   :  { %s363_s24 = scalar_lea.hbm %s569_s1, 256 }
   0x5   :  { %p364_p0 = scmp.ne.s32.totalorder %s569_s1, %s363_s24  ;;  %p367_p1 = scmp.lt.u32.totalorder %s363_s24, %s569_s1 }
   0x7   :  { %p369_p2 = pnand %p367_p1, %p364_p0 }
   0x9   :  { %372 = shalt.err (!%p369_p2)
}
   0xa   :  { %s373_s29 = scalar_lea.vmem %s31_s19, 256  ;;  %p378_p4 = scmp.lt.s32.totalorder %s31_s19, %s31_s19 }
   0xb   :  { %p374_p3 = scmp.ne.s32.totalorder %s31_s19, %s373_s29  ;;  %p379_p5 = scmp.lt.s32.totalorder %s373_s29, %s373_s29 }
   0xd   :  { %p380_p6 = por %p379_p5, %p378_p4 }
   0xf   :  { %p381_p7 = pnand %p380_p6, %p374_p3 }
  0x11   :  { %384 = shalt.err (!%p381_p7)
}
  0x12   :  { %s459_s30 = smov 64   ;;  %s460_s6 = smov 4  }
  0x13   :  { %36 = dma.hbm_to_vmem [thread:$0]  %s569_s1, 256, %s31_s19, [#allocation6], %s459_s30, %s459_s30, %s460_s6  }
  0x14   :  { %s385_s11 = scalar_lea.hbm %s568_s0, 128 }
  0x15   :  { %p386_p8 = scmp.ne.s32.totalorder %s568_s0, %s385_s11  ;;  %p389_p9 = scmp.lt.u32.totalorder %s385_s11, %s568_s0 }
  0x17   :  { %p391_p10 = pnand %p389_p9, %p386_p8 }
  0x19   :  { %394 = shalt.err (!%p391_p10)
}
  0x1a   :  { %s395_s16 = scalar_lea.vmem %s495_s21, 128  ;;  %p400_p12 = scmp.lt.s32.totalorder %s495_s21, %s495_s21 }
  0x1b   :  { %p396_p11 = scmp.ne.s32.totalorder %s495_s21, %s395_s16  ;;  %p401_p13 = scmp.lt.s32.totalorder %s395_s16, %s395_s16 }
  0x1d   :  { %p402_p0 = por %p401_p13, %p400_p12 }
  0x1f   :  { %p403_p1 = pnand %p402_p0, %p396_p11 }
  0x21   :  { %406 = shalt.err (!%p403_p1)
}
  0x22   :  { %24 = dma.hbm_to_vmem [thread:$0]  %s568_s0, 128, %s495_s21, [#allocation3], %s459_s30, %s459_s30, %s460_s6  }
  0x23   :  { %s461_s18 = smov [#allocation7]   ;;  %s407_s23 = scalar_lea.hbm %s571_s3, 1024 }
  0x24   :  { %s44_s19 = sshll.u32 %s461_s18, 4  ;;  %p408_p2 = scmp.ne.s32.totalorder %s571_s3, %s407_s23  ;;  %s45_s19 = int_to_ptr.vmem [resolvable:$true] %s44_s19 }
  0x25   :  { %p411_p3 = scmp.lt.u32.totalorder %s407_s23, %s571_s3 }
  0x27   :  { %p413_p4 = pnand %p411_p3, %p408_p2 }
  0x29   :  { %416 = shalt.err (!%p413_p4)
}
  0x2a   :  { %s417_s28 = scalar_lea.vmem %s45_s19, 1024  ;;  %p422_p6 = scmp.lt.s32.totalorder %s45_s19, %s45_s19 }
  0x2b   :  { %p418_p5 = scmp.ne.s32.totalorder %s45_s19, %s417_s28  ;;  %p423_p7 = scmp.lt.s32.totalorder %s417_s28, %s417_s28 }
  0x2d   :  { %p424_p8 = por %p423_p7, %p422_p6 }
  0x2f   :  { %p425_p9 = pnand %p424_p8, %p418_p5 }
  0x31   :  { %428 = shalt.err (!%p425_p9)
}
  0x32   :  { %50 = dma.hbm_to_vmem [thread:$0]  %s571_s3, 1024, %s45_s19, [#allocation6], %s459_s30, %s459_s30, %s460_s6  }
  0x33   :  { %451 = dma.done.wait [#allocation3], 128  }
  0x34   :  { %452 = vsyncadd [#allocation3], 4294967168 }
  0x35   :  { %453 = dma.done.wait [#allocation6], 1280  }
  0x36   :  { %454 = vsyncadd [#allocation6], 4294966016  ;;  %v462_v0 = vmov 0.0   ;;  %vm463_vm0 = vmmov 0   ;;  %v352_v1 = vld [vmem:[#allocation5] sm:$0xff]   ;;  %v353_v2 = vld [vmem:[#allocation5 + $0x8] sm:$0xff]  }
  0x37   :  { %316 = vmatprep.subr.bf16.mxu0 %v462_v0  ;;  %320 = vmatprep.mubr.msk.bf16.mxu0 %vm463_vm0, %v462_v0  ;;  %v355_v3 = vld [vmem:[#allocation7] sm:$0xff]   ;;  %v354_v4 = vld [vmem:[#allocation2] sm:$0xff]   ;;  %vm93_vm1 = vcmask 261120   ;;  %v357_v6 = vld [vmem:[#allocation7 + $0x10] sm:$0xff]   ;;  %s464_s9 = smov [#allocation8]  }
  0x38   :  { %324 = vmatprep.subr.bf16.mxu1 %v462_v0  ;;  %340 = vmatprep.mubr.msk.bf16.mxu1 %vm463_vm0, %v462_v0  ;;  %v356_v5 = vld [vmem:[#allocation7 + $0x8] sm:$0xff]   ;;  %v358_v7 = vld [vmem:[#allocation7 + $0x18] sm:$0xff]   ;;  %v359_v8 = vld [vmem:[#allocation7 + $0x20] sm:$0xff]   ;;  %s268_s10 = sshll.u32 %s464_s9, 4  ;;  %s269_s10 = int_to_ptr.vmem [resolvable:$true] %s268_s10 }
  0x39   :  { %317 = vmatpush3.bf16.msra.mxu0 %v352_v1  ;;  %325 = vmatpush3.bf16.msra.mxu1 %v355_v3  ;;  %v360_v9 = vld [vmem:[#allocation7 + $0x28] sm:$0xff]   ;;  %v361_v10 = vld [vmem:[#allocation7 + $0x30] sm:$0xff]   ;;  %v362_v11 = vld [vmem:[#allocation7 + $0x38] sm:$0xff]   ;;  %p434_p11 = scmp.lt.s32.totalorder %s269_s10, %s269_s10 }
  0x3a   :  { %318 = vmatprep.subr.bf16.mxu0 %v462_v0  ;;  %326 = vmatprep.subr.bf16.mxu1 %v462_v0  ;;  %v281_v12 = vld [vmem:[%s570_s2] ss:$0 sm:$0xff]  ;;  %s429_s2 = scalar_lea.vmem %s269_s10, 128 }
  0x3b   :  { %v286_v22 = vld [vmem:[%s572_s4] ss:$0 sm:$0xff]  ;;  %p430_p10 = scmp.ne.s32.totalorder %s269_s10, %s429_s2  ;;  %p435_p12 = scmp.lt.s32.totalorder %s429_s2, %s429_s2 }
  0x3d   :  { %319 = vmatpush3.bf16.msra.mxu0 %v353_v2  ;;  %327 = vmatpush3.bf16.msra.mxu1 %v356_v5  ;;  %p436_p13 = por %p435_p12, %p434_p11 }
  0x3e   :  { %328 = vmatprep.subr.bf16.mxu1 %v462_v0 }
  0x3f   :  { %p437_p0 = pnand %p436_p13, %p430_p10 }
  0x40   :  { %321 = vmatmul.mubr.msk.bf16.vlgmr.msra.gmra.mrb[0].mxu0 %vm93_vm1, %v354_v4 }
  0x41   :  { %329 = vmatpush3.bf16.msra.mxu1 %v357_v6 }
  0x42   :  { %330 = vmatprep.subr.bf16.mxu1 %v462_v0 }
  0x45   :  { %331 = vmatpush3.bf16.msra.mxu1 %v358_v7 }
  0x46   :  { %332 = vmatprep.subr.bf16.mxu1 %v462_v0 }
  0x49   :  { %333 = vmatpush3.bf16.msra.mxu1 %v359_v8 }
  0x4a   :  { %334 = vmatprep.subr.bf16.mxu1 %v462_v0 }
  0x4d   :  { %335 = vmatpush3.bf16.msra.mxu1 %v360_v9 }
  0x4e   :  { %336 = vmatprep.subr.bf16.mxu1 %v462_v0 }
  0x51   :  { %337 = vmatpush3.bf16.msra.mxu1 %v361_v10 }
  0x52   :  { %338 = vmatprep.subr.bf16.mxu1 %v462_v0 }
  0x55   :  { %339 = vmatpush3.bf16.msra.mxu1 %v362_v11 }
 0x113   :  { %v131_v13 = vpop.f32.mrb[0].mxu0 }
 0x114   :  { %v132_v14 = vadd.f32 %v281_v12, %v131_v13  ;;  %v322_v15 = vpop.f32.mrb[1].mxu0 }
 0x115   :  { %v134_v16 = vpop.f32.mrb[2].mxu0 }
 0x116   :  { %v135_v17 = vadd.f32 %v281_v12, %v134_v16  ;;  %v323_v18 = vpop.f32.mrb[3].mxu0  ;;  %v138_v19 = vmax.f32 %v132_v14, 0.0 }
 0x118   :  { %v139_v20 = vmax.f32 %v135_v17, 0.0 }
 0x11a   :  { %v140_v21 = vpack.c.bf16 %v139_v20, %v138_v19 }
 0x11c   :  { %341 = vmatmul.mubr.bf16.vlgmr.msra.gmra.mrb[0].mxu1 %v140_v21 }
 0x1ef   :  { %v246_v23 = vpop.f32.mrb[0].mxu1 }
 0x1f0   :  { %v342_v24 = vpop.f32.mrb[1].mxu1  ;;  %v247_v26 = vadd.f32 %v286_v22, %v246_v23 }
 0x1f1   :  { %v249_v25 = vpop.f32.mrb[2].mxu1 }
 0x1f2   :  { %v250_v27 = vadd.f32 %v286_v22, %v249_v25  ;;  %v343_v28 = vpop.f32.mrb[3].mxu1 }
 0x1f4   :  { %v302_v29 = vpack.c.bf16 %v250_v27, %v247_v26 }
 0x1f6   :  { %303 = vst [vmem:[#allocation8] sm:$0xff] %v302_v29  }
 0x1f7   :  { %440 = shalt.err (!%p437_p0)
}
 0x1f8   :  { %s441_s12 = scalar_lea.hbm %s573_s5, 128 }
 0x1f9   :  { %p442_p1 = scmp.ne.s32.totalorder %s573_s5, %s441_s12  ;;  %p445_p2 = scmp.lt.u32.totalorder %s441_s12, %s573_s5 }
 0x1fb   :  { %p447_p3 = pnand %p445_p2, %p442_p1 }
 0x1fd   :  { %450 = shalt.err (!%p447_p3)
}
 0x1fe   :  { %274 = dma.vmem_to_hbm [thread:$0]  %s269_s10, 128, %s573_s5, [#allocation4], %s459_s30, %s459_s30, %s460_s6  }
 0x1ff   :  { %455 = dma.done.wait [#allocation4], 128  }
 0x200   :  { %456 = vsyncadd [#allocation4], 4294967168 }
 0x201   :  { %278 = vsyncpa [#allocation3], 1 }
 0x202   :  { %279 = vsyncpa [#allocation6], 1 }
 0x203   :  { %280 = vsyncpa [#allocation4], 1 }

// kernel: tpu_custom_call.1
= control target key start
LH: loop header
LB: loop body
LE: loop exit
PB: predicated region body
PF: predicated region fallthrough
CT: control target
= control target key end

     0   :  { %10 = vsyncpa [#allocation3], 0  ;;  %s568_s0 = inlined_call_operand.hbm [shape: bf16[16,32], index: 0, kind: input, shape index: {}]   ;;  %s569_s1 = inlined_call_operand.hbm [shape: bf16[32,128], index: 1, kind: input, shape index: {}]   ;;  %s570_s2 = inlined_call_operand.vmem [shape: f32[1,128], index: 2, kind: input, shape index: {}]   ;;  %s571_s3 = inlined_call_operand.hbm [shape: bf16[128,128], index: 3, kind: input, shape index: {}]   ;;  %s572_s4 = inlined_call_operand.vmem [shape: f32[1,128], index: 4, kind: input, shape index: {}]   ;;  %s573_s5 = inlined_call_operand.hbm [shape: bf16[16,128], index: 5, kind: output, shape index: {}]  }
   0x1   :  { %11 = vsyncpa [#allocation6], 0 }
   0x2   :  { %12 = vsyncpa [#allocation4], 0  ;;  %s457_s18 = smov [#allocation5]   ;;  %s458_s20 = smov [#allocation2]  }
   0x3   :  { %s30_s19 = sshll.u32 %s457_s18, 4  ;;  %s18_s21 = sshll.u32 %s458_s20, 4  ;;  %s31_s19 = int_to_ptr.vmem [resolvable:$true] %s30_s19  ;;  %s495_s21 = int_to_ptr.vmem [resolvable:$true] %s18_s21 }
   0x4   :  { %s363_s24 = scalar_lea.hbm %s569_s1, 256 }
   0x5   :  { %p364_p0 = scmp.ne.s32.totalorder %s569_s1, %s363_s24  ;;  %p367_p1 = scmp.lt.u32.totalorder %s363_s24, %s569_s1 }
   0x7   :  { %p369_p2 = pnand %p367_p1, %p364_p0 }
   0x9   :  { %372 = shalt.err (!%p369_p2)
}
   0xa   :  { %s373_s29 = scalar_lea.vmem %s31_s19, 256  ;;  %p378_p4 = scmp.lt.s32.totalorder %s31_s19, %s31_s19 }
   0xb   :  { %p374_p3 = scmp.ne.s32.totalorder %s31_s19, %s373_s29  ;;  %p379_p5 = scmp.lt.s32.totalorder %s373_s29, %s373_s29 }
   0xd   :  { %p380_p6 = por %p379_p5, %p378_p4 }
   0xf   :  { %p381_p7 = pnand %p380_p6, %p374_p3 }
  0x11   :  { %384 = shalt.err (!%p381_p7)
}
  0x12   :  { %s459_s30 = smov 64   ;;  %s460_s6 = smov 4  }
  0x13   :  { %36 = dma.hbm_to_vmem [thread:$0]  %s569_s1, 256, %s31_s19, [#allocation6], %s459_s30, %s459_s30, %s460_s6  }
  0x14   :  { %s385_s11 = scalar_lea.hbm %s568_s0, 128 }
  0x15   :  { %p386_p8 = scmp.ne.s32.totalorder %s568_s0, %s385_s11  ;;  %p389_p9 = scmp.lt.u32.totalorder %s385_s11, %s568_s0 }
  0x17   :  { %p391_p10 = pnand %p389_p9, %p386_p8 }
  0x19   :  { %394 = shalt.err (!%p391_p10)
}
  0x1a   :  { %s395_s16 = scalar_lea.vmem %s495_s21, 128  ;;  %p400_p12 = scmp.lt.s32.totalorder %s495_s21, %s495_s21 }
  0x1b   :  { %p396_p11 = scmp.ne.s32.totalorder %s495_s21, %s395_s16  ;;  %p401_p13 = scmp.lt.s32.totalorder %s395_s16, %s395_s16 }
  0x1d   :  { %p402_p0 = por %p401_p13, %p400_p12 }
  0x1f   :  { %p403_p1 = pnand %p402_p0, %p396_p11 }
  0x21   :  { %406 = shalt.err (!%p403_p1)
}
  0x22   :  { %24 = dma.hbm_to_vmem [thread:$0]  %s568_s0, 128, %s495_s21, [#allocation3], %s459_s30, %s459_s30, %s460_s6  }
  0x23   :  { %s461_s18 = smov [#allocation7]   ;;  %s407_s23 = scalar_lea.hbm %s571_s3, 1024 }
  0x24   :  { %s44_s19 = sshll.u32 %s461_s18, 4  ;;  %p408_p2 = scmp.ne.s32.totalorder %s571_s3, %s407_s23  ;;  %s45_s19 = int_to_ptr.vmem [resolvable:$true] %s44_s19 }
  0x25   :  { %p411_p3 = scmp.lt.u32.totalorder %s407_s23, %s571_s3 }
  0x27   :  { %p413_p4 = pnand %p411_p3, %p408_p2 }
  0x29   :  { %416 = shalt.err (!%p413_p4)
}
  0x2a   :  { %s417_s28 = scalar_lea.vmem %s45_s19, 1024  ;;  %p422_p6 = scmp.lt.s32.totalorder %s45_s19, %s45_s19 }
  0x2b   :  { %p418_p5 = scmp.ne.s32.totalorder %s45_s19, %s417_s28  ;;  %p423_p7 = scmp.lt.s32.totalorder %s417_s28, %s417_s28 }
  0x2d   :  { %p424_p8 = por %p423_p7, %p422_p6 }
  0x2f   :  { %p425_p9 = pnand %p424_p8, %p418_p5 }
  0x31   :  { %428 = shalt.err (!%p425_p9)
}
  0x32   :  { %50 = dma.hbm_to_vmem [thread:$0]  %s571_s3, 1024, %s45_s19, [#allocation6], %s459_s30, %s459_s30, %s460_s6  }
  0x33   :  { %451 = dma.done.wait [#allocation3], 128  }
  0x34   :  { %452 = vsyncadd [#allocation3], 4294967168 }
  0x35   :  { %453 = dma.done.wait [#allocation6], 1280  }
  0x36   :  { %454 = vsyncadd [#allocation6], 4294966016  ;;  %v462_v0 = vmov 0.0   ;;  %vm463_vm0 = vmmov 0   ;;  %v352_v1 = vld [vmem:[#allocation5] sm:$0xff]   ;;  %v353_v2 = vld [vmem:[#allocation5 + $0x8] sm:$0xff]  }
  0x37   :  { %316 = vmatprep.subr.bf16.mxu0 %v462_v0  ;;  %320 = vmatprep.mubr.msk.bf16.mxu0 %vm463_vm0, %v462_v0  ;;  %v355_v3 = vld [vmem:[#allocation7] sm:$0xff]   ;;  %v354_v4 = vld [vmem:[#allocation2] sm:$0xff]   ;;  %vm93_vm1 = vcmask 261120   ;;  %v357_v6 = vld [vmem:[#allocation7 + $0x10] sm:$0xff]   ;;  %s464_s9 = smov [#allocation8]  }
  0x38   :  { %324 = vmatprep.subr.bf16.mxu1 %v462_v0  ;;  %340 = vmatprep.mubr.msk.bf16.mxu1 %vm463_vm0, %v462_v0  ;;  %v356_v5 = vld [vmem:[#allocation7 + $0x8] sm:$0xff]   ;;  %v358_v7 = vld [vmem:[#allocation7 + $0x18] sm:$0xff]   ;;  %v359_v8 = vld [vmem:[#allocation7 + $0x20] sm:$0xff]   ;;  %s268_s10 = sshll.u32 %s464_s9, 4  ;;  %s269_s10 = int_to_ptr.vmem [resolvable:$true] %s268_s10 }
  0x39   :  { %317 = vmatpush3.bf16.msra.mxu0 %v352_v1  ;;  %325 = vmatpush3.bf16.msra.mxu1 %v355_v3  ;;  %v360_v9 = vld [vmem:[#allocation7 + $0x28] sm:$0xff]   ;;  %v361_v10 = vld [vmem:[#allocation7 + $0x30] sm:$0xff]   ;;  %v362_v11 = vld [vmem:[#allocation7 + $0x38] sm:$0xff]   ;;  %p434_p11 = scmp.lt.s32.totalorder %s269_s10, %s269_s10 }
  0x3a   :  { %318 = vmatprep.subr.bf16.mxu0 %v462_v0  ;;  %326 = vmatprep.subr.bf16.mxu1 %v462_v0  ;;  %v281_v12 = vld [vmem:[%s570_s2] ss:$0 sm:$0xff]  ;;  %s429_s2 = scalar_lea.vmem %s269_s10, 128 }
  0x3b   :  { %v286_v22 = vld [vmem:[%s572_s4] ss:$0 sm:$0xff]  ;;  %p430_p10 = scmp.ne.s32.totalorder %s269_s10, %s429_s2  ;;  %p435_p12 = scmp.lt.s32.totalorder %s429_s2, %s429_s2 }
  0x3d   :  { %319 = vmatpush3.bf16.msra.mxu0 %v353_v2  ;;  %327 = vmatpush3.bf16.msra.mxu1 %v356_v5  ;;  %p436_p13 = por %p435_p12, %p434_p11 }
  0x3e   :  { %328 = vmatprep.subr.bf16.mxu1 %v462_v0 }
  0x3f   :  { %p437_p0 = pnand %p436_p13, %p430_p10 }
  0x40   :  { %321 = vmatmul.mubr.msk.bf16.vlgmr.msra.gmra.mrb[0].mxu0 %vm93_vm1, %v354_v4 }
  0x41   :  { %329 = vmatpush3.bf16.msra.mxu1 %v357_v6 }
  0x42   :  { %330 = vmatprep.subr.bf16.mxu1 %v462_v0 }
  0x45   :  { %331 = vmatpush3.bf16.msra.mxu1 %v358_v7 }
  0x46   :  { %332 = vmatprep.subr.bf16.mxu1 %v462_v0 }
  0x49   :  { %333 = vmatpush3.bf16.msra.mxu1 %v359_v8 }
  0x4a   :  { %334 = vmatprep.subr.bf16.mxu1 %v462_v0 }
  0x4d   :  { %335 = vmatpush3.bf16.msra.mxu1 %v360_v9 }
  0x4e   :  { %336 = vmatprep.subr.bf16.mxu1 %v462_v0 }
  0x51   :  { %337 = vmatpush3.bf16.msra.mxu1 %v361_v10 }
  0x52   :  { %338 = vmatprep.subr.bf16.mxu1 %v462_v0 }
  0x55   :  { %339 = vmatpush3.bf16.msra.mxu1 %v362_v11 }
 0x113   :  { %v131_v13 = vpop.f32.mrb[0].mxu0 }
 0x114   :  { %v132_v14 = vadd.f32 %v281_v12, %v131_v13  ;;  %v322_v15 = vpop.f32.mrb[1].mxu0 }
 0x115   :  { %v134_v16 = vpop.f32.mrb[2].mxu0 }
 0x116   :  { %v135_v17 = vadd.f32 %v281_v12, %v134_v16  ;;  %v323_v18 = vpop.f32.mrb[3].mxu0  ;;  %v138_v19 = vmax.f32 %v132_v14, 0.0 }
 0x118   :  { %v139_v20 = vmax.f32 %v135_v17, 0.0 }
 0x11a   :  { %v140_v21 = vpack.c.bf16 %v139_v20, %v138_v19 }
 0x11c   :  { %341 = vmatmul.mubr.bf16.vlgmr.msra.gmra.mrb[0].mxu1 %v140_v21 }
 0x1ef   :  { %v246_v23 = vpop.f32.mrb[0].mxu1 }
 0x1f0   :  { %v342_v24 = vpop.f32.mrb[1].mxu1  ;;  %v247_v26 = vadd.f32 %v286_v22, %v246_v23 }
 0x1f1   :  { %v249_v25 = vpop.f32.mrb[2].mxu1 }
 0x1f2   :  { %v250_v27 = vadd.f32 %v286_v22, %v249_v25  ;;  %v343_v28 = vpop.f32.mrb[3].mxu1 }
 0x1f4   :  { %v302_v29 = vpack.c.bf16 %v250_v27, %v247_v26 }
 0x1f6   :  { %303 = vst [vmem:[#allocation8] sm:$0xff] %v302_v29  }
 0x1f7   :  { %440 = shalt.err (!%p437_p0)
}
 0x1f8   :  { %s441_s12 = scalar_lea.hbm %s573_s5, 128 }
 0x1f9   :  { %p442_p1 = scmp.ne.s32.totalorder %s573_s5, %s441_s12  ;;  %p445_p2 = scmp.lt.u32.totalorder %s441_s12, %s573_s5 }
 0x1fb   :  { %p447_p3 = pnand %p445_p2, %p442_p1 }
 0x1fd   :  { %450 = shalt.err (!%p447_p3)
}
 0x1fe   :  { %274 = dma.vmem_to_hbm [thread:$0]  %s269_s10, 128, %s573_s5, [#allocation4], %s459_s30, %s459_s30, %s460_s6  }
 0x1ff   :  { %455 = dma.done.wait [#allocation4], 128  }
 0x200   :  { %456 = vsyncadd [#allocation4], 4294967168 }
 0x201   :  { %278 = vsyncpa [#allocation3], 1 }
 0x202   :  { %279 = vsyncpa [#allocation6], 1 }
 0x203   :  { %280 = vsyncpa [#allocation4], 1 }

</bundles_post_ra>
